<compile_context>
chip_gen: v7x
topology: tpu7x:2x2x1
jax: 0.10.0
libtpu: 0.0.40
codegen_flags: <defaults>
</compile_context>

<pallas_src>
import math

import jax
import jax.numpy as jnp
from jax.experimental import pallas as pl
from jax.experimental.pallas import tpu as pltpu


def _fq_fusion_kernel(x_ref, q_ref, w_ref, b_ref, o_ref):
    # (tm, p*d_aux) @ (p*d_aux, p*d_model) on the MXU, f32 accumulation.
    proj = jnp.dot(q_ref[...], w_ref[...], preferred_element_type=jnp.float32)
    o_ref[...] = (x_ref[...].astype(jnp.float32) + proj + b_ref[...]).astype(
        o_ref.dtype)


def _packing_factor(d_model, d_aux, max_width=1024):
    """Smallest p with p*d_model and p*d_aux both multiples of 128 (lane-dense
    loads AND stores).  Falls back to output-only packing / p=1 if that would
    blow up the packed width."""
    pm = 128 // math.gcd(128, d_model)
    pa = 128 // math.gcd(128, d_aux)
    p = pm * pa // math.gcd(pm, pa)          # lcm(pm, pa)
    if p * d_model <= max_width and p * d_aux <= max_width:
        return p
    if pm * d_model <= max_width:
        return pm
    return 1


def fq_fusion(x_dec, q_aux, weight_t, bias, *, block_rows=2048):
    """Q = x_dec + (q_aux @ weight_t + bias) / sqrt(d_model).

    x_dec:    (B, N, d_model)
    q_aux:    (B, N, d_aux)
    weight_t: (d_aux, d_model)   (PyTorch nn.Linear weight, transposed)
    bias:     (d_model,)
    block_rows: tile height in *packed* rows.
    """
    B, N, d_model = x_dec.shape
    d_aux = q_aux.shape[-1]
    M = B * N

    # Fold 1/sqrt(d_model) into the parameters, kept in f32 (no re-rounding of
    # the scaled weights for low-precision weight dtypes).
    inv_scale = 1.0 / (d_model ** 0.5)
    w = weight_t.astype(jnp.float32) * inv_scale
    b = bias.astype(jnp.float32) * inv_scale

    p = _packing_factor(d_model, d_aux)

    if p > 1:
        # Block-diagonal weight so the packed matmul yields the packed output.
        w_bd = jnp.kron(jnp.eye(p, dtype=jnp.float32), w)
        b_bd = jnp.tile(b, (p,)).reshape(1, p * d_model)
    else:
        w_bd = w
        b_bd = b.reshape(1, d_model)

    # Pad only to a multiple of p (usually zero).  Ragged row tiles at the end
    # of the grid are handled by Pallas boundary masking, so NO padding to a
    # multiple of the tile size and no trailing full-array copies.
    pad_p = (-M) % p
    x2 = x_dec.reshape(M, d_model)
    q2 = q_aux.reshape(M, d_aux)
    if pad_p:
        x2 = jnp.pad(x2, ((0, pad_p), (0, 0)))
        q2 = jnp.pad(q2, ((0, pad_p), (0, 0)))
    rows = (M + pad_p) // p
    xp = x2.reshape(rows, p * d_model)
    qp = q2.reshape(rows, p * d_aux)

    # Row-tile size: as big as block_rows allows (multiple of 8 for f32
    # sublanes), but keep a few grid steps so megacore (v7x: 2 TCs) has work
    # to shard and the pipeline has something to overlap.
    target_steps = 4
    if rows < 8:
        tm = rows                                   # full-extent block
    else:
        tm = min(block_rows, (rows + target_steps - 1) // target_steps)
        tm = max(8, (tm // 8) * 8)
        tm = min(tm, max(8, (rows // 8) * 8))

    x_isz = jnp.dtype(x_dec.dtype).itemsize
    q_isz = jnp.dtype(q_aux.dtype).itemsize

    def _vmem_need(t):
        x_tile = t * p * d_model * x_isz
        o_tile = t * p * d_model * x_isz
        q_tile = t * p * d_aux * q_isz
        f32_tmp = 2 * t * p * d_model * 4           # proj + f32 upcast of x
        w_bytes = (p * d_aux) * (p * d_model) * 4
        b_bytes = p * d_model * 4
        # double-buffered tiles + (double-allocated) resident weight/bias + temps
        return 2 * (x_tile + o_tile + q_tile) + 2 * (w_bytes + b_bytes) + f32_tmp

    VMEM_BUDGET = 40 * 1024 * 1024                  # safe on v5e/v6e (128 MiB) and v7x (64 MiB)
    while tm > 8 and _vmem_need(tm) > VMEM_BUDGET:
        tm = max(8, ((tm // 2) // 8) * 8)

    vmem_limit = int(min(64 * 1024 * 1024,
                         max(16 * 1024 * 1024, int(1.5 * _vmem_need(tm)))))

    grid = (pl.cdiv(rows, tm),)

    cost = pl.CostEstimate(
        flops=2 * M * d_aux * d_model,
        transcendentals=0,
        bytes_accessed=(M * d_model * x_isz * 2          # x read + out write
                        + M * d_aux * q_isz               # q read
                        + (p * d_aux) * (p * d_model) * 4 + p * d_model * 4),
    )

    out = pl.pallas_call(
        _fq_fusion_kernel,
        out_shape=jax.ShapeDtypeStruct((rows, p * d_model), x_dec.dtype),
        grid_spec=pltpu.PrefetchScalarGridSpec(
            num_scalar_prefetch=0,
            grid=grid,
            in_specs=[
                pl.BlockSpec((tm, p * d_model), lambda i: (i, 0)),         # x tile
                pl.BlockSpec((tm, p * d_aux), lambda i: (i, 0)),           # q tile
                pl.BlockSpec((p * d_aux, p * d_model), lambda i: (0, 0)),  # weight (resident)
                pl.BlockSpec((1, p * d_model), lambda i: (0, 0)),          # bias   (resident)
            ],
            out_specs=pl.BlockSpec((tm, p * d_model), lambda i: (i, 0)),
        ),
        compiler_params=pltpu.CompilerParams(
            dimension_semantics=("parallel",),
            vmem_limit_bytes=vmem_limit,
        ),
        cost_estimate=cost,
    )(xp, qp, w_bd, b_bd)

    out = out.reshape(rows * p, d_model)
    if pad_p:
        out = out[:M]
    return out.reshape(B, N, d_model)


def fq_fusion_ref(x_dec, q_aux, weight_t, bias):
    d_model = x_dec.shape[-1]
    proj = (jnp.einsum("bna,am->bnm", q_aux, weight_t) + bias) / (d_model ** 0.5)
    return x_dec + proj


if __name__ == "__main__":
    # Small shapes consistent with the module: batch=2, seq=8, d_aux=16, d_model=32
    B, N, d_aux, d_model = 2, 8, 16, 32

    key = jax.random.PRNGKey(0)
    kx, kq, kw, kb = jax.random.split(key, 4)

    x_dec = jax.random.normal(kx, (B, N, d_model), dtype=jnp.float32)
    q_aux = jax.random.normal(kq, (B, N, d_aux), dtype=jnp.float32)

    # Deterministic Linear(d_aux, d_model) params (Kaiming-uniform-ish bounds).
    bound = 1.0 / (d_aux ** 0.5)
    # PyTorch stores weight as (d_model, d_aux); we keep the transposed layout.
    weight_t = jax.random.uniform(kw, (d_aux, d_model), jnp.float32, -bound, bound)
    bias = jax.random.uniform(kb, (d_model,), jnp.float32, -bound, bound)

    out = jax.jit(fq_fusion)(x_dec, q_aux, weight_t, bias)
    jax.block_until_ready(out)

    ref = fq_fusion_ref(x_dec, q_aux, weight_t, bias)
    assert out.shape == (B, N, d_model)
    assert jnp.allclose(out, ref, atol=1e-5, rtol=1e-5)

    print("KERNEL_OK")
</pallas_src>

<mosaic_0001>
module attributes {stable_mosaic.version = 11 : i64} {
  func.func @_fq_fusion_kernel(%arg0: i32, %arg1: memref<2x256xf32, #tpu.memory_space<vmem>>, %arg2: memref<2x128xf32, #tpu.memory_space<vmem>>, %arg3: memref<128x256xf32, #tpu.memory_space<vmem>>, %arg4: memref<1x256xf32, #tpu.memory_space<vmem>>, %arg5: memref<2x256xf32, #tpu.memory_space<vmem>>) attributes {dimension_semantics = [#tpu.dimension_semantics<parallel>], iteration_bounds = array<i64: 1>, scalar_prefetch = 0 : i64, scratch_operands = 0 : i64, tpu.core_type = #tpu.core_type<tc>, window_params = [{transform_indices = @transform_0, window_bounds = array<i64: 2, 256>}, {transform_indices = @transform_1, window_bounds = array<i64: 2, 128>}, {pipeline_mode = #tpu.pipeline_mode<synchronous>, transform_indices = @transform_2, window_bounds = array<i64: 128, 256>}, {pipeline_mode = #tpu.pipeline_mode<synchronous>, transform_indices = @transform_3, window_bounds = array<i64: 1, 256>}, {transform_indices = @transform_4, window_bounds = array<i64: 2, 256>}]} {
    %c0 = arith.constant 0 : index
    %c0_0 = arith.constant 0 : index
    %0 = vector.load %arg2[%c0, %c0_0] : memref<2x128xf32, #tpu.memory_space<vmem>>, vector<2x128xf32>
    %c0_1 = arith.constant 0 : index
    %c0_2 = arith.constant 0 : index
    %1 = vector.load %arg3[%c0_1, %c0_2] : memref<128x256xf32, #tpu.memory_space<vmem>>, vector<128x256xf32>
    %cst = arith.constant dense<0.000000e+00> : vector<2x256xf32>
    %2 = tpu.matmul %0, %1, %cst {dimension_numbers = #tpu.dot_dimension_numbers<[1], [0], [0], [1], [0, 0, 1, 1], [], []>} : vector<2x128xf32>, vector<128x256xf32>, vector<2x256xf32> -> vector<2x256xf32>
    %c0_3 = arith.constant 0 : index
    %c0_4 = arith.constant 0 : index
    %3 = vector.load %arg1[%c0_3, %c0_4] : memref<2x256xf32, #tpu.memory_space<vmem>>, vector<2x256xf32>
    %4 = arith.addf %3, %2 : vector<2x256xf32>
    %c0_5 = arith.constant 0 : index
    %c0_6 = arith.constant 0 : index
    %5 = vector.load %arg4[%c0_5, %c0_6] : memref<1x256xf32, #tpu.memory_space<vmem>>, vector<1x256xf32>
    %6 = vector.broadcast %5 : vector<1x256xf32> to vector<2x256xf32>
    %7 = arith.addf %4, %6 : vector<2x256xf32>
    %c0_7 = arith.constant 0 : index
    %c0_8 = arith.constant 0 : index
    %8 = vector.load %arg5[%c0_7, %c0_8] : memref<2x256xf32, #tpu.memory_space<vmem>>, vector<2x256xf32>
    tpu.vector_store %arg5[%c0_7, %c0_8], %7 {strides = array<i32>} : memref<2x256xf32, #tpu.memory_space<vmem>>, vector<2x256xf32>,
    return
  }
  func.func @transform_0(%arg0: i32) -> (i32, i32) {
    %c0_i32 = arith.constant 0 : i32
    %c0_i32_0 = arith.constant 0 : i32
    return %arg0, %c0_i32 : i32, i32
  }
  func.func @transform_1(%arg0: i32) -> (i32, i32) {
    %c0_i32 = arith.constant 0 : i32
    %c0_i32_0 = arith.constant 0 : i32
    return %arg0, %c0_i32 : i32, i32
  }
  func.func @transform_2(%arg0: i32) -> (i32, i32) {
    %c0_i32 = arith.constant 0 : i32
    %c0_i32_0 = arith.constant 0 : i32
    %c0_i32_1 = arith.constant 0 : i32
    return %c0_i32, %c0_i32_0 : i32, i32
  }
  func.func @transform_3(%arg0: i32) -> (i32, i32) {
    %c0_i32 = arith.constant 0 : i32
    %c0_i32_0 = arith.constant 0 : i32
    %c0_i32_1 = arith.constant 0 : i32
    return %c0_i32, %c0_i32_0 : i32, i32
  }
  func.func @transform_4(%arg0: i32) -> (i32, i32) {
    %c0_i32 = arith.constant 0 : i32
    %c0_i32_0 = arith.constant 0 : i32
    return %arg0, %c0_i32 : i32, i32
  }
}

</mosaic_0001>

<bundles_post_ra>
// kernel: tile.8
= control target key start
LH: loop header
LB: loop body
LE: loop exit
PB: predicated region body
PF: predicated region fallthrough
CT: control target
= control target key end

     0   :  { %s22_s0 = inlined_call_operand.vmem [shape: f32[32], index: 0, kind: input, shape index: {}]   ;;  %s23_s1 = inlined_call_operand.vmem [shape: f32[8,32], index: 1, kind: output, shape index: {}]  }
   0x1   :  { %v4_v0 = vld [vmem:[%s22_s0] ss:$0 sm:$0xff] }
   0x2   :  { %5 = vst [vmem:[%s23_s1] sm:$0xff] %v4_v0 }

// kernel: tile.9
= control target key start
LH: loop header
LB: loop body
LE: loop exit
PB: predicated region body
PF: predicated region fallthrough
CT: control target
= control target key end

     0   :  { %s7_s6 = smov 3  ;;  %s14_s9 = smov 3  ;;  %vm4_vm0 = vcmask 261120   ;;  %vm11_vm1 = vcmask 1048320   ;;  %vm18_vm2 = vcmask 785920   ;;  %vm25_vm3 = vcmask 523520   ;;  %s76_s0 = inlined_call_operand.vmem [shape: f32[8,32], index: 0, kind: input, shape index: {}]   ;;  %s77_s1 = inlined_call_operand.vmem [shape: f32[1,256], index: 1, kind: output, shape index: {}]  }
   0x1   :  { %v38_v0 = vld [vmem:[%s76_s0 + $0x3] ss:$4 sm:%s7_s6]   ;;  %s45_s10 = smov 96   ;;  %s21_s11 = smov 3  ;;  %v39_v1 = vld [vmem:[%s76_s0 + $0x2] ss:$4 sm:%s14_s9]  }
   0x2   :  { %9 = vrot.lane.b32.xlu0 %v38_v0, %s45_s10  ;;  %v40_v2 = vld [vmem:[%s76_s0 + $0x1] ss:$4 sm:%s21_s11]   ;;  %s2_s16 = smov 3  ;;  %s46_s17 = smov 32  }
   0x3   :  { %23 = vrot.lane.b32.xlu1 %v40_v2, %s46_s17  ;;  %v3_v3 = vld [vmem:[%s76_s0] ss:$4 sm:%s2_s16]   ;;  %s47_s0 = smov 64  }
   0x4   :  { %5 = vst.msk [vmem:[#allocation0] ss:$8 sm:$0x3] %vm4_vm0, %v3_v3  }
   0x6   :  { %16 = vrot.lane.b32.xlu0 %v39_v1, %s47_s0 }
  0x74   :  { %v10_v4 = vpop.permute.xlu0 %9  }
  0x75   :  { %12 = vst.msk [vmem:[#allocation0] ss:$8 sm:$0x3] %vm11_vm1, %v10_v4   ;;  %v24_v5 = vpop.permute.xlu1 %23  }
  0x78   :  { %v17_v6 = vpop.permute.xlu0 %16  }
  0x79   :  { %19 = vst.msk [vmem:[#allocation0] ss:$8 sm:$0x3] %vm18_vm2, %v17_v6  }
  0x7a   :  { %26 = vst.msk [vmem:[#allocation0] ss:$8 sm:$0x3] %vm25_vm3, %v24_v5  }
  0x81   :  { %v30_v7 = vld [vmem:[#allocation0] sm:$0x1]  ;;  %v34_v8 = vld [vmem:[#allocation0 + $0x8] sm:$0x1] }
  0x82   :  { %32 = vst [vmem:[%s77_s1] sm:$0x1] %v30_v7  ;;  %41 = vst [vmem:[%s77_s1 + $0x1] sm:$0x1] %v34_v8 }

</bundles_post_ra>
